<compile_context>
chip_gen: v7x
topology: tpu7x:2x2x1
jax: 0.10.0
libtpu: 0.0.40
codegen_flags: <defaults>
</compile_context>

<pallas_src>
import functools

import jax
import jax.numpy as jnp
from jax.experimental import pallas as pl
from jax.experimental.pallas import tpu as pltpu


def mha_kernel(q_ref, k_ref, v_ref, wq_ref, wk_ref, wv_ref, wo_ref, o_ref, *,
               num_heads, scale):
    """Fused MHA forward over the full (B, S, D) problem (single grid step).

    q_ref/k_ref/v_ref : (B, S, D_in)    activations, f32
    wq_ref/wk_ref     : (H, D_in, dk)   per-head projection weights, bf16
    wv_ref            : (H, D_in, dv)
    wo_ref            : (H, dv, D_out)  per-head row-blocks of the output proj
    o_ref             : (B, S, D_out)
    """
    f32 = jnp.float32
    bf16 = jnp.bfloat16
    B, S, _ = q_ref.shape
    H = num_heads
    BH = B * H
    D_out = o_ref.shape[-1]

    def heads_of_x(ref):
        # (B, S, D) -> (B*H, S, D): replicate each batch's activations once per
        # head so every stage is a single head-batched contraction (no lane
        # slicing).  Major-dim broadcast only; the (S, D) tile layout is untouched.
        x = ref[...].astype(bf16)
        return jnp.broadcast_to(x[:, None], (B, H, S, x.shape[-1])).reshape(
            BH, S, x.shape[-1])

    def batches_of_w(ref):
        # (H, Da, Db) -> (B*H, Da, Db): replicate the per-head weights once per
        # batch (major-dim broadcast only).
        w = ref[...]
        return jnp.broadcast_to(w[None], (B,) + w.shape).reshape(
            BH, w.shape[1], w.shape[2])

    xq, xk, xv = heads_of_x(q_ref), heads_of_x(k_ref), heads_of_x(v_ref)
    wq, wk, wv, wo = (batches_of_w(wq_ref), batches_of_w(wk_ref),
                      batches_of_w(wv_ref), batches_of_w(wo_ref))

    # Head-batched projections (bf16 operands, f32 MXU accumulation).
    q = jnp.einsum('nsd,ndf->nsf', xq, wq, preferred_element_type=f32)
    k = jnp.einsum('nsd,ndf->nsf', xk, wk, preferred_element_type=f32)
    v = jnp.einsum('nsd,ndf->nsf', xv, wv, preferred_element_type=f32)

    # Scaled dot-product attention, batched over all (batch, head) pairs.
    qs = (q * scale).astype(bf16)                             # query scaling
    logits = jnp.einsum('nqd,nkd->nqk', qs, k.astype(bf16),
                        preferred_element_type=f32)           # (BH, S, S), f32
    # TODO(synk): src_mask / bias_mask (None in eval mode) would be applied to
    # `logits` here; dropout on the attention weights is identity at p=0.0.
    m = jnp.max(logits, axis=-1, keepdims=True)
    p = jnp.exp(logits - m)                                   # f32 exp (v5e-safe)
    inv = pl.reciprocal(jnp.sum(p, axis=-1, keepdims=True), approx=True)
    attn = (p * inv).astype(bf16)
    ctx = jnp.einsum('nqk,nkd->nqd', attn, v.astype(bf16),
                     preferred_element_type=f32)              # (BH, S, dv)

    # Output projection: per-(batch, head) partial products accumulated over
    # the head axis (major-dim reshape + sum) -- no lane-axis concat of contexts.
    oh = jnp.einsum('nsd,ndo->nso', ctx.astype(bf16), wo,
                    preferred_element_type=f32)               # (BH, S, D_out)
    out = jnp.sum(oh.reshape(B, H, S, D_out), axis=1)         # (B, S, D_out)
    o_ref[...] = out.astype(o_ref.dtype)
    # TODO(synk): D_out=32 (<128 lanes) keeps the final store a masked vst; the
    # following op in the surrounding model (residual / layernorm) would need
    # to be fused here to present a lane-dense output slab.


def multi_head_attention(queries, keys, values, wq, wk, wv, wo, *, num_heads):
    """queries/keys/values: (B, S, D_in); wq/wk: (D_in, Dk); wv: (D_in, Dv);
    wo: (Dv, D_out).  Weights in math layout (in, out), as in nn.Linear^T."""
    B, S, D_in = queries.shape
    Dk = wq.shape[1]
    Dv = wv.shape[1]
    D_out = wo.shape[1]
    assert Dk % num_heads == 0 and Dv % num_heads == 0
    dk = Dk // num_heads
    dv = Dv // num_heads
    scale = float(dk) ** -0.5

    # Wrapper-side layout plumbing (free under XLA): split the weights per head
    # so the kernel needs zero in-kernel lane slicing / concatenation, and
    # store them bf16 (MXU-native on v5e/v6e/v7x, halves weight DMA bytes).
    wq_h = wq.reshape(D_in, num_heads, dk).transpose(1, 0, 2).astype(jnp.bfloat16)
    wk_h = wk.reshape(D_in, num_heads, dk).transpose(1, 0, 2).astype(jnp.bfloat16)
    wv_h = wv.reshape(D_in, num_heads, dv).transpose(1, 0, 2).astype(jnp.bfloat16)
    wo_h = wo.reshape(num_heads, dv, D_out).astype(jnp.bfloat16)

    kernel = functools.partial(mha_kernel, num_heads=num_heads, scale=scale)

    flops = 2 * B * S * (
        D_in * Dk          # Q projection
        + D_in * Dk        # K projection
        + D_in * Dv        # V projection
        + S * Dk           # Q @ K^T (all heads)
        + S * Dv           # softmax(.) @ V (all heads)
        + Dv * D_out)      # output projection
    bytes_accessed = (4 * 3 * B * S * D_in                       # f32 activations
                      + 2 * (2 * D_in * Dk + D_in * Dv + Dv * D_out)  # bf16 weights
                      + 4 * B * S * D_out)                       # f32 output
    transcendentals = B * num_heads * S * S                      # exp in softmax

    return pl.pallas_call(
        kernel,
        out_shape=jax.ShapeDtypeStruct((B, S, D_out), queries.dtype),
        # No grid: everything fits comfortably in VMEM, so a single kernel
        # invocation processes all batches (no per-step pipeline overhead on
        # single-TC v5e/v6e; weights copied into VMEM exactly once).
        in_specs=[pl.BlockSpec(memory_space=pltpu.MemorySpace.VMEM)] * 7,
        out_specs=pl.BlockSpec(memory_space=pltpu.MemorySpace.VMEM),
        compiler_params=pltpu.CompilerParams(
            vmem_limit_bytes=32 * 1024 * 1024,   # safe on v5e/v6e/v7x
        ),
        cost_estimate=pl.CostEstimate(
            flops=flops,
            transcendentals=transcendentals,
            bytes_accessed=bytes_accessed),
    )(queries, keys, values, wq_h, wk_h, wv_h, wo_h)


def mha_reference(queries, keys, values, wq, wk, wv, wo, *, num_heads):
    """Pure-JAX (f32) reference with the exact PyTorch module semantics."""
    B, S, _ = queries.shape
    Dk = wq.shape[1]
    Dv = wv.shape[1]
    dk = Dk // num_heads
    dv = Dv // num_heads
    scale = float(dk) ** -0.5
    q = (queries @ wq).reshape(B, S, num_heads, dk).transpose(0, 2, 1, 3) * scale
    k = (keys @ wk).reshape(B, S, num_heads, dk).transpose(0, 2, 1, 3)
    v = (values @ wv).reshape(B, S, num_heads, dv).transpose(0, 2, 1, 3)
    logits = jnp.einsum('bhqd,bhkd->bhqk', q, k)
    w = jax.nn.softmax(logits, axis=-1)
    ctx = jnp.einsum('bhqk,bhkd->bhqd', w, v)
    ctx = ctx.transpose(0, 2, 1, 3).reshape(B, S, Dv)
    return ctx @ wo


if __name__ == "__main__":
    # Module config: input_depth=32, total_key_depth=32, total_value_depth=32,
    # output_depth=32, num_heads=4 (head dim 8), dropout=0.0, no masks.
    B, S = 2, 8
    input_depth = 32
    total_key_depth = 32
    total_value_depth = 32
    output_depth = 32
    num_heads = 4

    key = jax.random.PRNGKey(0)
    kq, kk, kv, kwq, kwk, kwv, kwo = jax.random.split(key, 7)

    queries = jax.random.normal(kq, (B, S, input_depth), dtype=jnp.float32)
    keys = jax.random.normal(kk, (B, S, input_depth), dtype=jnp.float32)
    values = jax.random.normal(kv, (B, S, input_depth), dtype=jnp.float32)

    # Math-layout weights (in, out); PyTorch nn.Linear stores the transpose.
    wq = jax.random.normal(kwq, (input_depth, total_key_depth), jnp.float32) * 0.1
    wk = jax.random.normal(kwk, (input_depth, total_key_depth), jnp.float32) * 0.1
    wv = jax.random.normal(kwv, (input_depth, total_value_depth), jnp.float32) * 0.1
    wo = jax.random.normal(kwo, (total_value_depth, output_depth), jnp.float32) * 0.1

    out = multi_head_attention(queries, keys, values, wq, wk, wv, wo,
                               num_heads=num_heads)
    out = jax.block_until_ready(out)

    ref = mha_reference(queries, keys, values, wq, wk, wv, wo,
                        num_heads=num_heads)
    assert out.shape == (B, S, output_depth)
    max_err = float(jnp.max(jnp.abs(out - ref)))
    # bf16 MXU operands + approx reciprocal => looser tolerance than pure f32.
    assert jnp.allclose(out, ref, atol=3e-2, rtol=3e-2), f"max abs err {max_err}"

    print("KERNEL_OK")
</pallas_src>

<mosaic_0001>
module attributes {stable_mosaic.version = 11 : i64} {
  func.func @mha_kernel(%arg0: memref<2x8x32xf32, #tpu.memory_space<vmem>>, %arg1: memref<2x8x32xf32, #tpu.memory_space<vmem>>, %arg2: memref<2x8x32xf32, #tpu.memory_space<vmem>>, %arg3: memref<4x32x8xbf16, #tpu.memory_space<vmem>>, %arg4: memref<4x32x8xbf16, #tpu.memory_space<vmem>>, %arg5: memref<4x32x8xbf16, #tpu.memory_space<vmem>>, %arg6: memref<4x8x32xbf16, #tpu.memory_space<vmem>>, %arg7: memref<2x8x32xf32, #tpu.memory_space<vmem>>) attributes {dimension_semantics = [], scalar_prefetch = 0 : i64, scratch_operands = 0 : i64, tpu.core_type = #tpu.core_type<tc>} {
    %c0 = arith.constant 0 : index
    %c0_0 = arith.constant 0 : index
    %c0_1 = arith.constant 0 : index
    %0 = vector.load %arg0[%c0, %c0_0, %c0_1] : memref<2x8x32xf32, #tpu.memory_space<vmem>>, vector<2x8x32xf32>
    %1 = arith.truncf %0 : vector<2x8x32xf32> to vector<2x8x32xbf16>
    %2 = vector.shape_cast %1 : vector<2x8x32xbf16> to vector<2x1x8x32xbf16>
    %3 = vector.shape_cast %2 : vector<2x1x8x32xbf16> to vector<2x1x8x32xbf16>
    %4 = vector.broadcast %3 : vector<2x1x8x32xbf16> to vector<2x4x8x32xbf16>
    %5 = vector.shape_cast %4 : vector<2x4x8x32xbf16> to vector<8x8x32xbf16>
    %c0_2 = arith.constant 0 : index
    %c0_3 = arith.constant 0 : index
    %c0_4 = arith.constant 0 : index
    %6 = vector.load %arg1[%c0_2, %c0_3, %c0_4] : memref<2x8x32xf32, #tpu.memory_space<vmem>>, vector<2x8x32xf32>
    %7 = arith.truncf %6 : vector<2x8x32xf32> to vector<2x8x32xbf16>
    %8 = vector.shape_cast %7 : vector<2x8x32xbf16> to vector<2x1x8x32xbf16>
    %9 = vector.shape_cast %8 : vector<2x1x8x32xbf16> to vector<2x1x8x32xbf16>
    %10 = vector.broadcast %9 : vector<2x1x8x32xbf16> to vector<2x4x8x32xbf16>
    %11 = vector.shape_cast %10 : vector<2x4x8x32xbf16> to vector<8x8x32xbf16>
    %c0_5 = arith.constant 0 : index
    %c0_6 = arith.constant 0 : index
    %c0_7 = arith.constant 0 : index
    %12 = vector.load %arg2[%c0_5, %c0_6, %c0_7] : memref<2x8x32xf32, #tpu.memory_space<vmem>>, vector<2x8x32xf32>
    %13 = arith.truncf %12 : vector<2x8x32xf32> to vector<2x8x32xbf16>
    %14 = vector.shape_cast %13 : vector<2x8x32xbf16> to vector<2x1x8x32xbf16>
    %15 = vector.shape_cast %14 : vector<2x1x8x32xbf16> to vector<2x1x8x32xbf16>
    %16 = vector.broadcast %15 : vector<2x1x8x32xbf16> to vector<2x4x8x32xbf16>
    %17 = vector.shape_cast %16 : vector<2x4x8x32xbf16> to vector<8x8x32xbf16>
    %c0_8 = arith.constant 0 : index
    %c0_9 = arith.constant 0 : index
    %c0_10 = arith.constant 0 : index
    %18 = vector.load %arg3[%c0_8, %c0_9, %c0_10] : memref<4x32x8xbf16, #tpu.memory_space<vmem>>, vector<4x32x8xbf16>
    %19 = vector.shape_cast %18 : vector<4x32x8xbf16> to vector<1x4x32x8xbf16>
    %20 = vector.shape_cast %19 : vector<1x4x32x8xbf16> to vector<1x4x32x8xbf16>
    %21 = vector.broadcast %20 : vector<1x4x32x8xbf16> to vector<2x4x32x8xbf16>
    %22 = vector.shape_cast %21 : vector<2x4x32x8xbf16> to vector<8x32x8xbf16>
    %c0_11 = arith.constant 0 : index
    %c0_12 = arith.constant 0 : index
    %c0_13 = arith.constant 0 : index
    %23 = vector.load %arg4[%c0_11, %c0_12, %c0_13] : memref<4x32x8xbf16, #tpu.memory_space<vmem>>, vector<4x32x8xbf16>
    %24 = vector.shape_cast %23 : vector<4x32x8xbf16> to vector<1x4x32x8xbf16>
    %25 = vector.shape_cast %24 : vector<1x4x32x8xbf16> to vector<1x4x32x8xbf16>
    %26 = vector.broadcast %25 : vector<1x4x32x8xbf16> to vector<2x4x32x8xbf16>
    %27 = vector.shape_cast %26 : vector<2x4x32x8xbf16> to vector<8x32x8xbf16>
    %c0_14 = arith.constant 0 : index
    %c0_15 = arith.constant 0 : index
    %c0_16 = arith.constant 0 : index
    %28 = vector.load %arg5[%c0_14, %c0_15, %c0_16] : memref<4x32x8xbf16, #tpu.memory_space<vmem>>, vector<4x32x8xbf16>
    %29 = vector.shape_cast %28 : vector<4x32x8xbf16> to vector<1x4x32x8xbf16>
    %30 = vector.shape_cast %29 : vector<1x4x32x8xbf16> to vector<1x4x32x8xbf16>
    %31 = vector.broadcast %30 : vector<1x4x32x8xbf16> to vector<2x4x32x8xbf16>
    %32 = vector.shape_cast %31 : vector<2x4x32x8xbf16> to vector<8x32x8xbf16>
    %c0_17 = arith.constant 0 : index
    %c0_18 = arith.constant 0 : index
    %c0_19 = arith.constant 0 : index
    %33 = vector.load %arg6[%c0_17, %c0_18, %c0_19] : memref<4x8x32xbf16, #tpu.memory_space<vmem>>, vector<4x8x32xbf16>
    %34 = vector.shape_cast %33 : vector<4x8x32xbf16> to vector<1x4x8x32xbf16>
    %35 = vector.shape_cast %34 : vector<1x4x8x32xbf16> to vector<1x4x8x32xbf16>
    %36 = vector.broadcast %35 : vector<1x4x8x32xbf16> to vector<2x4x8x32xbf16>
    %37 = vector.shape_cast %36 : vector<2x4x8x32xbf16> to vector<8x8x32xbf16>
    "tpu.trace_start"() <{level = 10 : i32, message = "nsd,ndf->nsf"}> : () -> ()
    %cst = arith.constant dense<0.000000e+00> : vector<8x8x8xf32>
    %38 = tpu.matmul %5, %22, %cst {dimension_numbers = #tpu.dot_dimension_numbers<[2], [1], [1], [2], [0, 0, 0, 1, 1, 2], [0], [0]>} : vector<8x8x32xbf16>, vector<8x32x8xbf16>, vector<8x8x8xf32> -> vector<8x8x8xf32>
    %cst_20 = arith.constant dense<0.000000e+00> : vector<8x8x8xf32>
    %39 = tpu.matmul %11, %27, %cst_20 {dimension_numbers = #tpu.dot_dimension_numbers<[2], [1], [1], [2], [0, 0, 0, 1, 1, 2], [0], [0]>} : vector<8x8x32xbf16>, vector<8x32x8xbf16>, vector<8x8x8xf32> -> vector<8x8x8xf32>
    %cst_21 = arith.constant dense<0.000000e+00> : vector<8x8x8xf32>
    %40 = tpu.matmul %17, %32, %cst_21 {dimension_numbers = #tpu.dot_dimension_numbers<[2], [1], [1], [2], [0, 0, 0, 1, 1, 2], [0], [0]>} : vector<8x8x32xbf16>, vector<8x32x8xbf16>, vector<8x8x8xf32> -> vector<8x8x8xf32>
    "tpu.trace_stop"() : () -> ()
    %cst_22 = arith.constant 0.353553385 : f32
    %41 = vector.broadcast %cst_22 : f32 to vector<8x8x8xf32>
    %42 = arith.mulf %38, %41 : vector<8x8x8xf32>
    %43 = arith.truncf %42 : vector<8x8x8xf32> to vector<8x8x8xbf16>
    %44 = arith.truncf %39 : vector<8x8x8xf32> to vector<8x8x8xbf16>
    "tpu.trace_start"() <{level = 10 : i32, message = "nqd,nkd->nqk"}> : () -> ()
    %cst_23 = arith.constant dense<0.000000e+00> : vector<8x8x8xf32>
    %45 = tpu.matmul %43, %44, %cst_23 {dimension_numbers = #tpu.dot_dimension_numbers<[2], [2], [1], [1], [0, 0, 0, 1, 1, 1], [0], [0]>} : vector<8x8x8xbf16>, vector<8x8x8xbf16>, vector<8x8x8xf32> -> vector<8x8x8xf32>
    "tpu.trace_stop"() : () -> ()
    %cst_24 = arith.constant dense<0xFF800000> : vector<8x8xf32>
    %46 = vector.multi_reduction <maximumf>, %45, %cst_24 [2] : vector<8x8x8xf32> to vector<8x8xf32>
    %47 = vector.shape_cast %46 : vector<8x8xf32> to vector<8x8x1xf32>
    %48 = vector.broadcast %47 : vector<8x8x1xf32> to vector<8x8x8xf32>
    %49 = arith.subf %45, %48 : vector<8x8x8xf32>
    %50 = math.exp %49 : vector<8x8x8xf32>
    %cst_25 = arith.constant dense<0.000000e+00> : vector<8x8xf32>
    %51 = vector.multi_reduction <add>, %50, %cst_25 [2] : vector<8x8x8xf32> to vector<8x8xf32>
    %52 = vector.shape_cast %51 : vector<8x8xf32> to vector<8x8x1xf32>
    %53 = tpu.reciprocal %52 {approx = true} : vector<8x8x1xf32> -> vector<8x8x1xf32>
    %54 = vector.broadcast %53 : vector<8x8x1xf32> to vector<8x8x8xf32>
    %55 = arith.mulf %50, %54 : vector<8x8x8xf32>
    %56 = arith.truncf %55 : vector<8x8x8xf32> to vector<8x8x8xbf16>
    %57 = arith.truncf %40 : vector<8x8x8xf32> to vector<8x8x8xbf16>
    "tpu.trace_start"() <{level = 10 : i32, message = "nqk,nkd->nqd"}> : () -> ()
    %cst_26 = arith.constant dense<0.000000e+00> : vector<8x8x8xf32>
    %58 = tpu.matmul %56, %57, %cst_26 {dimension_numbers = #tpu.dot_dimension_numbers<[2], [1], [1], [2], [0, 0, 0, 1, 1, 2], [0], [0]>} : vector<8x8x8xbf16>, vector<8x8x8xbf16>, vector<8x8x8xf32> -> vector<8x8x8xf32>
    "tpu.trace_stop"() : () -> ()
    %59 = arith.truncf %58 : vector<8x8x8xf32> to vector<8x8x8xbf16>
    "tpu.trace_start"() <{level = 10 : i32, message = "nsd,ndo->nso"}> : () -> ()
    %cst_27 = arith.constant dense<0.000000e+00> : vector<8x8x32xf32>
    %60 = tpu.matmul %59, %37, %cst_27 {dimension_numbers = #tpu.dot_dimension_numbers<[2], [1], [1], [2], [0, 0, 0, 1, 1, 2], [0], [0]>} : vector<8x8x8xbf16>, vector<8x8x32xbf16>, vector<8x8x32xf32> -> vector<8x8x32xf32>
    "tpu.trace_stop"() : () -> ()
    %61 = vector.shape_cast %60 : vector<8x8x32xf32> to vector<2x4x8x32xf32>
    %cst_28 = arith.constant dense<0.000000e+00> : vector<2x8x32xf32>
    %62 = vector.multi_reduction <add>, %61, %cst_28 [1] : vector<2x4x8x32xf32> to vector<2x8x32xf32>
    %c0_29 = arith.constant 0 : index
    %c0_30 = arith.constant 0 : index
    %c0_31 = arith.constant 0 : index
    %63 = vector.load %arg7[%c0_29, %c0_30, %c0_31] : memref<2x8x32xf32, #tpu.memory_space<vmem>>, vector<2x8x32xf32>
    tpu.vector_store %arg7[%c0_29, %c0_30, %c0_31], %62 {strides = array<i32>} : memref<2x8x32xf32, #tpu.memory_space<vmem>>, vector<2x8x32xf32>,
    return
  }
}

</mosaic_0001>

<bundles_post_ra>
// kernel: tpu_custom_call.1
= control target key start
LH: loop header
LB: loop body
LE: loop exit
PB: predicated region body
PF: predicated region fallthrough
CT: control target
= control target key end

     0   :  { %v3090_v1 = vmov 0.0   ;;  %vm3091_vm0 = vmmov 0   ;;  %vm104_vm1 = vcmask 261120   ;;  %s3563_s0 = inlined_call_operand.vmem [shape: f32[2,8,32], index: 0, kind: input, shape index: {}]   ;;  %s3564_s1 = inlined_call_operand.vmem [shape: f32[2,8,32], index: 1, kind: input, shape index: {}]   ;;  %s3565_s2 = inlined_call_operand.vmem [shape: f32[2,8,32], index: 2, kind: input, shape index: {}]   ;;  %s3566_s3 = inlined_call_operand.vmem [shape: bf16[4,32,8], index: 3, kind: input, shape index: {}]   ;;  %s3567_s4 = inlined_call_operand.vmem [shape: bf16[4,32,8], index: 4, kind: input, shape index: {}]   ;;  %s3568_s5 = inlined_call_operand.vmem [shape: bf16[4,32,8], index: 5, kind: input, shape index: {}]   ;;  %s3569_s6 = inlined_call_operand.vmem [shape: bf16[4,8,32], index: 6, kind: input, shape index: {}]   ;;  %s3570_s7 = inlined_call_operand.hbm [shape: f32[2,8,32], index: 7, kind: output, shape index: {}]  }
   0x1   :  { %v3010_v0 = vld [vmem:[%s3566_s3] sm:$0xff]   ;;  %2669 = vmatprep.subr.bf16.mxu0 %v3090_v1  ;;  %2677 = vmatprep.subr.bf16.mxu1 %v3090_v1  ;;  %v3011_v2 = vld [vmem:[%s3566_s3 + $0x10] sm:$0xff]   ;;  %v3012_v3 = vld [vmem:[%s3566_s3 + $0x8] sm:$0xff]  }
   0x2   :  { %2670 = vmatpush3.bf16.msra.mxu0 %v3010_v0  ;;  %2673 = vmatprep.mubr.msk.bf16.mxu0 %vm3091_vm0, %v3090_v1  ;;  %v3013_v4 = vld [vmem:[%s3566_s3 + $0x18] sm:$0xff]   ;;  %v28_v5 = vld [vmem:[%s3563_s0] sm:$0xff]  ;;  %v3015_v8 = vld [vmem:[%s3566_s3 + $0x30] sm:$0xff]  }
   0x3   :  { %2678 = vmatpush3.bf16.msra.mxu1 %v3011_v2  ;;  %2671 = vmatprep.subr.bf16.mxu0 %v3090_v1  ;;  %v30_v6 = vpack.c.bf16 %v28_v5, %v28_v5  ;;  %v3014_v7 = vld [vmem:[%s3566_s3 + $0x20] sm:$0xff]   ;;  %v3016_v9 = vld [vmem:[%s3566_s3 + $0x28] sm:$0xff]   ;;  %v3017_v10 = vld [vmem:[%s3566_s3 + $0x38] sm:$0xff]  }
   0x4   :  { %2679 = vmatprep.subr.bf16.mxu1 %v3090_v1  ;;  %2681 = vmatprep.mubr.msk.bf16.mxu1 %vm3091_vm0, %v3090_v1  ;;  %v29_v11 = vld [vmem:[%s3563_s0 + $0x8] sm:$0xff] }
   0x5   :  { %v31_v12 = vpack.c.bf16 %v29_v11, %v29_v11 }
   0x6   :  { %2672 = vmatpush3.bf16.msra.mxu0 %v3012_v3 }
   0x7   :  { %2680 = vmatpush3.bf16.msra.mxu1 %v3013_v4  ;;  %2685 = vmatprep.subr.bf16.mxu0 %v3090_v1 }
   0x8   :  { %2693 = vmatprep.subr.bf16.mxu1 %v3090_v1 }
   0x9   :  { %2674 = vmatmul.mubr.msk.bf16.vlgmr.msra.gmra.mrb[0].mxu0 %vm104_vm1, %v30_v6 }
   0xa   :  { %2682 = vmatmul.mubr.msk.bf16.vlgmr.msra.gmra.mrb[0].mxu1 %vm104_vm1, %v30_v6  ;;  %2686 = vmatpush3.bf16.msra.mxu0 %v3014_v7 }
   0xb   :  { %2694 = vmatpush3.bf16.msra.mxu1 %v3015_v8  ;;  %2687 = vmatprep.subr.bf16.mxu0 %v3090_v1 }
   0xc   :  { %2695 = vmatprep.subr.bf16.mxu1 %v3090_v1  ;;  %2689 = vmatprep.mubr.msk.bf16.mxu0 %vm3091_vm0, %v3090_v1 }
   0xd   :  { %2697 = vmatprep.mubr.msk.bf16.mxu1 %vm3091_vm0, %v3090_v1 }
   0xe   :  { %2688 = vmatpush3.bf16.msra.mxu0 %v3016_v9 }
   0xf   :  { %2696 = vmatpush3.bf16.msra.mxu1 %v3017_v10  ;;  %2701 = vmatprep.subr.bf16.mxu0 %v3090_v1 }
  0x10   :  { %2709 = vmatprep.subr.bf16.mxu1 %v3090_v1 }
  0x11   :  { %2690 = vmatmul.mubr.msk.bf16.vlgmr.msra.gmra.mrb[4].mxu0 %vm104_vm1, %v30_v6 }
  0x12   :  { %2698 = vmatmul.mubr.msk.bf16.vlgmr.msra.gmra.mrb[4].mxu1 %vm104_vm1, %v30_v6  ;;  %2702 = vmatpush3.bf16.msra.mxu0 %v3010_v0 }
  0x13   :  { %2710 = vmatpush3.bf16.msra.mxu1 %v3011_v2  ;;  %2703 = vmatprep.subr.bf16.mxu0 %v3090_v1 }
  0x14   :  { %2711 = vmatprep.subr.bf16.mxu1 %v3090_v1  ;;  %2705 = vmatprep.mubr.msk.bf16.mxu0 %vm3091_vm0, %v3090_v1 }
  0x15   :  { %2713 = vmatprep.mubr.msk.bf16.mxu1 %vm3091_vm0, %v3090_v1 }
  0x16   :  { %2704 = vmatpush3.bf16.msra.mxu0 %v3012_v3 }
  0x17   :  { %2712 = vmatpush3.bf16.msra.mxu1 %v3013_v4  ;;  %2717 = vmatprep.subr.bf16.mxu0 %v3090_v1 }
  0x18   :  { %12 = vsyncpa [#allocation3], 0  ;;  %2725 = vmatprep.subr.bf16.mxu1 %v3090_v1  ;;  %v3018_v13 = vld [vmem:[%s3567_s4] sm:$0xff]   ;;  %v3019_v14 = vld [vmem:[%s3567_s4 + $0x10] sm:$0xff]   ;;  %vm1239_vm2 = vcmask 64512   ;;  %vm1715_vm3 = vcmask 1043456  }
  0x19   :  { %2706 = vmatmul.mubr.msk.bf16.vlgmr.msra.gmra.mrb[8].mxu0 %vm104_vm1, %v31_v12  ;;  %v3020_v15 = vld [vmem:[%s3567_s4 + $0x8] sm:$0xff]   ;;  %v32_v16 = vld [vmem:[%s3564_s1] sm:$0xff]  ;;  %v3021_v17 = vld [vmem:[%s3567_s4 + $0x18] sm:$0xff]  }
  0x1a   :  { %2714 = vmatmul.mubr.msk.bf16.vlgmr.msra.gmra.mrb[8].mxu1 %vm104_vm1, %v31_v12  ;;  %2718 = vmatpush3.bf16.msra.mxu0 %v3014_v7  ;;  %v34_v18 = vpack.c.bf16 %v32_v16, %v32_v16  ;;  %v3022_v19 = vld [vmem:[%s3567_s4 + $0x20] sm:$0xff]   ;;  %v3023_v20 = vld [vmem:[%s3567_s4 + $0x30] sm:$0xff]   ;;  %v3024_v21 = vld [vmem:[%s3567_s4 + $0x28] sm:$0xff]  }
  0x1b   :  { %2726 = vmatpush3.bf16.msra.mxu1 %v3015_v8  ;;  %2719 = vmatprep.subr.bf16.mxu0 %v3090_v1  ;;  %v3025_v22 = vld [vmem:[%s3567_s4 + $0x38] sm:$0xff]   ;;  %v33_v23 = vld [vmem:[%s3564_s1 + $0x8] sm:$0xff]  ;;  %v3026_v25 = vld [vmem:[%s3568_s5] sm:$0xff]  }
  0x1c   :  { %2727 = vmatprep.subr.bf16.mxu1 %v3090_v1  ;;  %2721 = vmatprep.mubr.msk.bf16.mxu0 %vm3091_vm0, %v3090_v1  ;;  %v35_v24 = vpack.c.bf16 %v33_v23, %v33_v23  ;;  %v3027_v26 = vld [vmem:[%s3568_s5 + $0x10] sm:$0xff]   ;;  %v3028_v27 = vld [vmem:[%s3568_s5 + $0x8] sm:$0xff]   ;;  %v3029_v28 = vld [vmem:[%s3568_s5 + $0x18] sm:$0xff]  }
  0x1d   :  { %2729 = vmatprep.mubr.msk.bf16.mxu1 %vm3091_vm0, %v3090_v1  ;;  %v36_v29 = vld [vmem:[%s3565_s2] sm:$0xff]  ;;  %v3031_v32 = vld [vmem:[%s3568_s5 + $0x30] sm:$0xff]   ;;  %v3032_v33 = vld [vmem:[%s3568_s5 + $0x28] sm:$0xff]  }
  0x1e   :  { %2720 = vmatpush3.bf16.msra.mxu0 %v3016_v9  ;;  %v38_v30 = vpack.c.bf16 %v36_v29, %v36_v29  ;;  %v3030_v31 = vld [vmem:[%s3568_s5 + $0x20] sm:$0xff]   ;;  %v3033_v34 = vld [vmem:[%s3568_s5 + $0x38] sm:$0xff]   ;;  %v37_v35 = vld [vmem:[%s3565_s2 + $0x8] sm:$0xff] }
  0x1f   :  { %2728 = vmatpush3.bf16.msra.mxu1 %v3017_v10  ;;  %2733 = vmatprep.subr.bf16.mxu0 %v3090_v1  ;;  %v39_v36 = vpack.c.bf16 %v37_v35, %v37_v35 }
  0x20   :  { %2741 = vmatprep.subr.bf16.mxu1 %v3090_v1 }
  0x21   :  { %2722 = vmatmul.mubr.msk.bf16.vlgmr.msra.gmra.mrb[12].mxu0 %vm104_vm1, %v31_v12 }
  0x22   :  { %2730 = vmatmul.mubr.msk.bf16.vlgmr.msra.gmra.mrb[12].mxu1 %vm104_vm1, %v31_v12  ;;  %2734 = vmatpush3.bf16.msra.mxu0 %v3018_v13 }
  0x23   :  { %2742 = vmatpush3.bf16.msra.mxu1 %v3019_v14  ;;  %2735 = vmatprep.subr.bf16.mxu0 %v3090_v1 }
  0x24   :  { %2743 = vmatprep.subr.bf16.mxu1 %v3090_v1  ;;  %2737 = vmatprep.mubr.msk.bf16.mxu0 %vm3091_vm0, %v3090_v1 }
  0x25   :  { %2745 = vmatprep.mubr.msk.bf16.mxu1 %vm3091_vm0, %v3090_v1 }
  0x26   :  { %2736 = vmatpush3.bf16.msra.mxu0 %v3020_v15 }
  0x27   :  { %2744 = vmatpush3.bf16.msra.mxu1 %v3021_v17  ;;  %2749 = vmatprep.subr.bf16.mxu0 %v3090_v1 }
  0x28   :  { %2757 = vmatprep.subr.bf16.mxu1 %v3090_v1 }
  0x29   :  { %2738 = vmatmul.mubr.msk.bf16.vlgmr.msra.gmra.mrb[16].mxu0 %vm104_vm1, %v34_v18 }
  0x2a   :  { %2746 = vmatmul.mubr.msk.bf16.vlgmr.msra.gmra.mrb[16].mxu1 %vm104_vm1, %v34_v18  ;;  %2750 = vmatpush3.bf16.msra.mxu0 %v3022_v19 }
  0x2b   :  { %2758 = vmatpush3.bf16.msra.mxu1 %v3023_v20  ;;  %2751 = vmatprep.subr.bf16.mxu0 %v3090_v1 }
  0x2c   :  { %2759 = vmatprep.subr.bf16.mxu1 %v3090_v1  ;;  %2753 = vmatprep.mubr.msk.bf16.mxu0 %vm3091_vm0, %v3090_v1 }
  0x2d   :  { %2761 = vmatprep.mubr.msk.bf16.mxu1 %vm3091_vm0, %v3090_v1 }
  0x2e   :  { %2752 = vmatpush3.bf16.msra.mxu0 %v3024_v21 }
  0x2f   :  { %2760 = vmatpush3.bf16.msra.mxu1 %v3025_v22  ;;  %2765 = vmatprep.subr.bf16.mxu0 %v3090_v1 }
  0x30   :  { %2773 = vmatprep.subr.bf16.mxu1 %v3090_v1 }
  0x31   :  { %2754 = vmatmul.mubr.msk.bf16.vlgmr.msra.gmra.mrb[20].mxu0 %vm104_vm1, %v34_v18 }
  0x32   :  { %2762 = vmatmul.mubr.msk.bf16.vlgmr.msra.gmra.mrb[20].mxu1 %vm104_vm1, %v34_v18  ;;  %2766 = vmatpush3.bf16.msra.mxu0 %v3018_v13 }
  0x33   :  { %2774 = vmatpush3.bf16.msra.mxu1 %v3019_v14  ;;  %2767 = vmatprep.subr.bf16.mxu0 %v3090_v1 }
  0x34   :  { %2775 = vmatprep.subr.bf16.mxu1 %v3090_v1  ;;  %2769 = vmatprep.mubr.msk.bf16.mxu0 %vm3091_vm0, %v3090_v1 }
  0x35   :  { %2777 = vmatprep.mubr.msk.bf16.mxu1 %vm3091_vm0, %v3090_v1 }
  0x36   :  { %2768 = vmatpush3.bf16.msra.mxu0 %v3020_v15 }
  0x37   :  { %2776 = vmatpush3.bf16.msra.mxu1 %v3021_v17  ;;  %2781 = vmatprep.subr.bf16.mxu0 %v3090_v1 }
  0x38   :  { %2789 = vmatprep.subr.bf16.mxu1 %v3090_v1 }
  0x39   :  { %2770 = vmatmul.mubr.msk.bf16.vlgmr.msra.gmra.mrb[24].mxu0 %vm104_vm1, %v35_v24 }
  0x3a   :  { %2778 = vmatmul.mubr.msk.bf16.vlgmr.msra.gmra.mrb[24].mxu1 %vm104_vm1, %v35_v24  ;;  %2782 = vmatpush3.bf16.msra.mxu0 %v3022_v19 }
  0x3b   :  { %2790 = vmatpush3.bf16.msra.mxu1 %v3023_v20  ;;  %2783 = vmatprep.subr.bf16.mxu0 %v3090_v1 }
  0x3c   :  { %2791 = vmatprep.subr.bf16.mxu1 %v3090_v1  ;;  %2785 = vmatprep.mubr.msk.bf16.mxu0 %vm3091_vm0, %v3090_v1 }
  0x3d   :  { %2793 = vmatprep.mubr.msk.bf16.mxu1 %vm3091_vm0, %v3090_v1 }
  0x3e   :  { %2784 = vmatpush3.bf16.msra.mxu0 %v3024_v21 }
  0x3f   :  { %2792 = vmatpush3.bf16.msra.mxu1 %v3025_v22  ;;  %2797 = vmatprep.subr.bf16.mxu0 %v3090_v1 }
  0x40   :  { %2805 = vmatprep.subr.bf16.mxu1 %v3090_v1 }
  0x41   :  { %2786 = vmatmul.mubr.msk.bf16.vlgmr.msra.gmra.mrb[28].mxu0 %vm104_vm1, %v35_v24 }
  0x42   :  { %2794 = vmatmul.mubr.msk.bf16.vlgmr.msra.gmra.mrb[28].mxu1 %vm104_vm1, %v35_v24  ;;  %2798 = vmatpush3.bf16.msra.mxu0 %v3026_v25 }
  0x43   :  { %2806 = vmatpush3.bf16.msra.mxu1 %v3027_v26  ;;  %2799 = vmatprep.subr.bf16.mxu0 %v3090_v1 }
  0x44   :  { %2807 = vmatprep.subr.bf16.mxu1 %v3090_v1  ;;  %2801 = vmatprep.mubr.msk.bf16.mxu0 %vm3091_vm0, %v3090_v1 }
  0x45   :  { %2809 = vmatprep.mubr.msk.bf16.mxu1 %vm3091_vm0, %v3090_v1 }
  0x46   :  { %2800 = vmatpush3.bf16.msra.mxu0 %v3028_v27 }
  0x47   :  { %2813 = vmatprep.subr.bf16.mxu0 %v3090_v1  ;;  %2808 = vmatpush3.bf16.msra.mxu1 %v3029_v28 }
  0x48   :  { %2821 = vmatprep.subr.bf16.mxu1 %v3090_v1 }
  0x49   :  { %2802 = vmatmul.mubr.msk.bf16.vlgmr.msra.gmra.mrb[32].mxu0 %vm104_vm1, %v38_v30 }
  0x4a   :  { %2814 = vmatpush3.bf16.msra.mxu0 %v3030_v31  ;;  %2817 = vmatprep.mubr.msk.bf16.mxu0 %vm3091_vm0, %v3090_v1 }
  0x4b   :  { %2810 = vmatmul.mubr.msk.bf16.vlgmr.msra.gmra.mrb[32].mxu1 %vm104_vm1, %v38_v30  ;;  %2815 = vmatprep.subr.bf16.mxu0 %v3090_v1 }
  0x4c   :  { %2822 = vmatpush3.bf16.msra.mxu1 %v3031_v32  ;;  %2825 = vmatprep.mubr.msk.bf16.mxu1 %vm3091_vm0, %v3090_v1 }
  0x4d   :  { %2823 = vmatprep.subr.bf16.mxu1 %v3090_v1 }
  0x4e   :  { %2816 = vmatpush3.bf16.msra.mxu0 %v3032_v33 }
  0x4f   :  { %2829 = vmatprep.subr.bf16.mxu0 %v3090_v1 }
  0x50   :  { %2824 = vmatpush3.bf16.msra.mxu1 %v3033_v34 }
  0x51   :  { %2818 = vmatmul.mubr.msk.bf16.vlgmr.msra.gmra.mrb[36].mxu0 %vm104_vm1, %v38_v30  ;;  %2837 = vmatprep.subr.bf16.mxu1 %v3090_v1 }
  0x52   :  { %2830 = vmatpush3.bf16.msra.mxu0 %v3026_v25  ;;  %2833 = vmatprep.mubr.msk.bf16.mxu0 %vm3091_vm0, %v3090_v1 }
  0x53   :  { %2826 = vmatmul.mubr.msk.bf16.vlgmr.msra.gmra.mrb[36].mxu1 %vm104_vm1, %v38_v30  ;;  %2831 = vmatprep.subr.bf16.mxu0 %v3090_v1 }
  0x54   :  { %2838 = vmatpush3.bf16.msra.mxu1 %v3027_v26  ;;  %2841 = vmatprep.mubr.msk.bf16.mxu1 %vm3091_vm0, %v3090_v1 }
  0x55   :  { %2839 = vmatprep.subr.bf16.mxu1 %v3090_v1 }
  0x56   :  { %2832 = vmatpush3.bf16.msra.mxu0 %v3028_v27 }
  0x57   :  { %2845 = vmatprep.subr.bf16.mxu0 %v3090_v1 }
  0x58   :  { %2840 = vmatpush3.bf16.msra.mxu1 %v3029_v28 }
  0x59   :  { %2834 = vmatmul.mubr.msk.bf16.vlgmr.msra.gmra.mrb[40].mxu0 %vm104_vm1, %v39_v36  ;;  %2853 = vmatprep.subr.bf16.mxu1 %v3090_v1 }
  0x5a   :  { %2846 = vmatpush3.bf16.msra.mxu0 %v3030_v31  ;;  %2849 = vmatprep.mubr.msk.bf16.mxu0 %vm3091_vm0, %v3090_v1 }
  0x5b   :  { %2842 = vmatmul.mubr.msk.bf16.vlgmr.msra.gmra.mrb[40].mxu1 %vm104_vm1, %v39_v36  ;;  %2847 = vmatprep.subr.bf16.mxu0 %v3090_v1 }
  0x5c   :  { %2854 = vmatpush3.bf16.msra.mxu1 %v3031_v32  ;;  %2857 = vmatprep.mubr.msk.bf16.mxu1 %vm3091_vm0, %v3090_v1 }
  0x5d   :  { %2855 = vmatprep.subr.bf16.mxu1 %v3090_v1 }
  0x5e   :  { %2848 = vmatpush3.bf16.msra.mxu0 %v3032_v33 }
  0x5f   :  { %2861 = vmatprep.subr.bf16.mxu0 %v3090_v1 }
  0x60   :  { %2856 = vmatpush3.bf16.msra.mxu1 %v3033_v34 }
  0x61   :  { %2850 = vmatmul.mubr.msk.bf16.vlgmr.msra.gmra.mrb[44].mxu0 %vm104_vm1, %v39_v36  ;;  %2867 = vmatprep.subr.bf16.mxu1 %v3090_v1 }
  0x62   :  { %2863 = vmatprep.mubr.msk.bf16.mxu0 %vm3091_vm0, %v3090_v1 }
  0x63   :  { %2858 = vmatmul.mubr.msk.bf16.vlgmr.msra.gmra.mrb[44].mxu1 %vm104_vm1, %v39_v36 }
  0x64   :  { %2869 = vmatprep.mubr.msk.bf16.mxu1 %vm3091_vm0, %v3090_v1 }
  0xdc   :  { %v142_v37 = vpop.f32.mrb[0].mxu0 }
  0xdd   :  { %v2675_v38 = vpop.f32.mrb[1].mxu0  ;;  %v194_v39 = vpop.f32.mrb[0].mxu1  ;;  %v1215_v18 = vmul.f32 0.35355338, %v142_v37 }
  0xde   :  { %v145_v40 = vpop.f32.mrb[2].mxu0  ;;  %v2683_v41 = vpop.f32.mrb[1].mxu1  ;;  %v1216_v19 = vmul.f32 0.35355338, %v194_v39 }
  0xdf   :  { %v2676_v42 = vpop.f32.mrb[3].mxu0  ;;  %v197_v43 = vpop.f32.mrb[2].mxu1  ;;  %v1223_v21 = vpack.c.bf16 %v1215_v18, %v1215_v18 }
  0xe0   :  { %v2684_v44 = vpop.f32.mrb[3].mxu1  ;;  %v1224_v25 = vpack.c.bf16 %v1216_v19, %v1216_v19 }
  0xe4   :  { %v246_v45 = vpop.f32.mrb[4].mxu0 }
  0xe5   :  { %v2691_v46 = vpop.f32.mrb[5].mxu0  ;;  %v298_v47 = vpop.f32.mrb[4].mxu1  ;;  %v1217_v34 = vmul.f32 0.35355338, %v246_v45 }
  0xe6   :  { %v249_v48 = vpop.f32.mrb[6].mxu0  ;;  %v2699_v49 = vpop.f32.mrb[5].mxu1  ;;  %v1218_v35 = vmul.f32 0.35355338, %v298_v47 }
  0xe7   :  { %v2692_v50 = vpop.f32.mrb[7].mxu0  ;;  %v301_v51 = vpop.f32.mrb[6].mxu1  ;;  %v1225_v37 = vpack.c.bf16 %v1217_v34, %v1217_v34 }
  0xe8   :  { %v2700_v52 = vpop.f32.mrb[7].mxu1  ;;  %v1226_v41 = vpack.c.bf16 %v1218_v35, %v1218_v35 }
  0xec   :  { %v3351_v53 = vpop.f32.mrb[8].mxu0 }
  0xed   :  { %v2707_v54 = vpop.f32.mrb[9].mxu0  ;;  %v3353_v55 = vpop.f32.mrb[8].mxu1  ;;  %v1219_v50 = vmul.f32 0.35355338, %v3351_v53 }
  0xee   :  { %v344_v56 = vpop.f32.mrb[10].mxu0  ;;  %v2715_v57 = vpop.f32.mrb[9].mxu1  ;;  %v1220_v51 = vmul.f32 0.35355338, %v3353_v55 }
  0xef   :  { %v2708_v58 = vpop.f32.mrb[11].mxu0  ;;  %v384_v59 = vpop.f32.mrb[10].mxu1  ;;  %v1227_v54 = vpack.c.bf16 %v1219_v50, %v1219_v50 }
  0xf0   :  { %v2716_v60 = vpop.f32.mrb[11].mxu1  ;;  %v1228_v59 = vpack.c.bf16 %v1220_v51, %v1220_v51 }
  0xf4   :  { %v3355_v61 = vpop.f32.mrb[12].mxu0 }
  0xf5   :  { %v2723_v62 = vpop.f32.mrb[13].mxu0  ;;  %v3357_v63 = vpop.f32.mrb[12].mxu1 }
  0xf6   :  { %v424_v0 = vpop.f32.mrb[14].mxu0  ;;  %v2731_v2 = vpop.f32.mrb[13].mxu1 }
  0xf7   :  { %v2724_v3 = vpop.f32.mrb[15].mxu0  ;;  %v464_v4 = vpop.f32.mrb[14].mxu1 }
  0xf8   :  { %v2732_v5 = vpop.f32.mrb[15].mxu1 }
  0xf9   :  { %v1221_v5 = vmul.f32 0.35355338, %v3355_v61 }
  0xfc   :  { %v516_v6 = vpop.f32.mrb[16].mxu0 }
  0xfd   :  { %v1231_v7 = vpack.c.bf16 %v516_v6, %v516_v6  ;;  %v568_v8 = vpop.f32.mrb[16].mxu1  ;;  %v2739_v9 = vpop.f32.mrb[17].mxu0  ;;  %v1222_v6 = vmul.f32 0.35355338, %v3357_v63 }
  0xfe   :  { %v1232_v10 = vpack.c.bf16 %v568_v8, %v568_v8  ;;  %v519_v11 = vpop.f32.mrb[18].mxu0  ;;  %v2747_v12 = vpop.f32.mrb[17].mxu1 }
  0xff   :  { %v1244_v13 = vsel %vm1239_vm2, %v1231_v7, 0  ;;  %v2740_v14 = vpop.f32.mrb[19].mxu0  ;;  %v571_v15 = vpop.f32.mrb[18].mxu1  ;;  %v1229_v7 = vpack.c.bf16 %v1221_v5, %v1221_v5  ;;  %v1230_v8 = vpack.c.bf16 %v1222_v6, %v1222_v6 }
 0x100   :  { %v1290_v16 = vsel %vm1239_vm2, %v1232_v10, 0  ;;  %v2748_v17 = vpop.f32.mrb[19].mxu1  ;;  %2862 = vmatpush3.bf16.xpose.msra.mxu0 %v1244_v13 }
 0x101   :  { %2868 = vmatpush3.bf16.xpose.msra.mxu1 %v1290_v16  ;;  %2873 = vmatprep.subr.bf16.mxu0 %v3090_v1 }
 0x102   :  { %2879 = vmatprep.subr.bf16.mxu1 %v3090_v1 }
 0x104   :  { %v620_v20 = vpop.f32.mrb[20].mxu0 }
 0x105   :  { %v1233_v22 = vpack.c.bf16 %v620_v20, %v620_v20  ;;  %v672_v23 = vpop.f32.mrb[20].mxu1  ;;  %v2755_v24 = vpop.f32.mrb[21].mxu0 }
 0x106   :  { %v1234_v26 = vpack.c.bf16 %v672_v23, %v672_v23  ;;  %v623_v27 = vpop.f32.mrb[22].mxu0  ;;  %v2763_v28 = vpop.f32.mrb[21].mxu1 }
 0x107   :  { %v1336_v29 = vsel %vm1239_vm2, %v1233_v22, 0  ;;  %v2756_v30 = vpop.f32.mrb[23].mxu0  ;;  %v675_v31 = vpop.f32.mrb[22].mxu1  ;;  %2864 = vmatmul.mubr.msk.bf16.vlgmr.msra.gmra.mrb[48].mxu0 %vm1239_vm2, %v1223_v21 }
 0x108   :  { %v1382_v32 = vsel %vm1239_vm2, %v1234_v26, 0  ;;  %2870 = vmatmul.mubr.msk.bf16.vlgmr.msra.gmra.mrb[48].mxu1 %vm1239_vm2, %v1224_v25  ;;  %v2764_v33 = vpop.f32.mrb[23].mxu1  ;;  %2874 = vmatpush3.bf16.xpose.msra.mxu0 %v1336_v29 }
 0x109   :  { %2880 = vmatpush3.bf16.xpose.msra.mxu1 %v1382_v32  ;;  %2875 = vmatprep.mubr.msk.bf16.mxu0 %vm3091_vm0, %v3090_v1 }
 0x10a   :  { %2881 = vmatprep.mubr.msk.bf16.mxu1 %vm3091_vm0, %v3090_v1  ;;  %2885 = vmatprep.subr.bf16.mxu0 %v3090_v1 }
 0x10b   :  { %2891 = vmatprep.subr.bf16.mxu1 %v3090_v1 }
 0x10c   :  { %v715_v36 = vpop.f32.mrb[24].mxu0 }
 0x10d   :  { %v1235_v38 = vpack.c.bf16 %v715_v36, %v715_v36  ;;  %v755_v39 = vpop.f32.mrb[24].mxu1  ;;  %v2771_v40 = vpop.f32.mrb[25].mxu0 }
 0x10e   :  { %v1236_v42 = vpack.c.bf16 %v755_v39, %v755_v39  ;;  %v718_v43 = vpop.f32.mrb[26].mxu0  ;;  %v2779_v44 = vpop.f32.mrb[25].mxu1 }
 0x10f   :  { %v1428_v45 = vsel %vm1239_vm2, %v1235_v38, 0  ;;  %v2772_v46 = vpop.f32.mrb[27].mxu0  ;;  %v758_v47 = vpop.f32.mrb[26].mxu1  ;;  %2876 = vmatmul.mubr.msk.bf16.vlgmr.msra.gmra.mrb[52].mxu0 %vm1239_vm2, %v1225_v37 }
 0x110   :  { %v1474_v48 = vsel %vm1239_vm2, %v1236_v42, 0  ;;  %2882 = vmatmul.mubr.msk.bf16.vlgmr.msra.gmra.mrb[52].mxu1 %vm1239_vm2, %v1226_v41  ;;  %v2780_v49 = vpop.f32.mrb[27].mxu1  ;;  %2886 = vmatpush3.bf16.xpose.msra.mxu0 %v1428_v45 }
 0x111   :  { %2892 = vmatpush3.bf16.xpose.msra.mxu1 %v1474_v48  ;;  %2887 = vmatprep.mubr.msk.bf16.mxu0 %vm3091_vm0, %v3090_v1 }
 0x112   :  { %2893 = vmatprep.mubr.msk.bf16.mxu1 %vm3091_vm0, %v3090_v1  ;;  %2897 = vmatprep.subr.bf16.mxu0 %v3090_v1 }
 0x113   :  { %2903 = vmatprep.subr.bf16.mxu1 %v3090_v1 }
 0x114   :  { %v795_v52 = vpop.f32.mrb[28].mxu0 }
 0x115   :  { %v1237_v56 = vpack.c.bf16 %v795_v52, %v795_v52  ;;  %v835_v57 = vpop.f32.mrb[28].mxu1  ;;  %v2787_v58 = vpop.f32.mrb[29].mxu0 }
 0x116   :  { %v1238_v53 = vpack.c.bf16 %v835_v57, %v835_v57  ;;  %v798_v60 = vpop.f32.mrb[30].mxu0  ;;  %v2795_v62 = vpop.f32.mrb[29].mxu1 }
 0x117   :  { %v1520_v0 = vsel %vm1239_vm2, %v1237_v56, 0  ;;  %v2788_v2 = vpop.f32.mrb[31].mxu0  ;;  %v838_v55 = vpop.f32.mrb[30].mxu1  ;;  %2888 = vmatmul.mubr.msk.bf16.vlgmr.msra.gmra.mrb[56].mxu0 %vm1239_vm2, %v1227_v54 }
 0x118   :  { %v1566_v3 = vsel %vm1239_vm2, %v1238_v53, 0  ;;  %2894 = vmatmul.mubr.msk.bf16.vlgmr.msra.gmra.mrb[56].mxu1 %vm1239_vm2, %v1228_v59  ;;  %v2796_v4 = vpop.f32.mrb[31].mxu1  ;;  %2898 = vmatpush3.bf16.xpose.msra.mxu0 %v1520_v0 }
 0x119   :  { %2904 = vmatpush3.bf16.xpose.msra.mxu1 %v1566_v3  ;;  %2899 = vmatprep.mubr.msk.bf16.mxu0 %vm3091_vm0, %v3090_v1 }
 0x11a   :  { %2905 = vmatprep.mubr.msk.bf16.mxu1 %vm3091_vm0, %v3090_v1  ;;  %2909 = vmatprep.subr.bf16.mxu0 %v3090_v1 }
 0x11b   :  { %2915 = vmatprep.subr.bf16.mxu1 %v3090_v1 }
 0x11c   :  { %v890_v61 = vpop.f32.mrb[32].mxu0 }
 0x11d   :  { %v1704_v63 = vpack.c.bf16 %v890_v61, %v890_v61  ;;  %v2803_v9 = vpop.f32.mrb[33].mxu0 }
 0x11e   :  { %v893_v10 = vpop.f32.mrb[34].mxu0  ;;  %v942_v11 = vpop.f32.mrb[32].mxu1 }
 0x11f   :  { %2900 = vmatmul.mubr.msk.bf16.vlgmr.msra.gmra.mrb[60].mxu0 %vm1239_vm2, %v1229_v7  ;;  %v1717_v12 = vsel %vm1715_vm3, %v1704_v63, 0  ;;  %v2804_v13 = vpop.f32.mrb[35].mxu0  ;;  %v1705_v14 = vpack.c.bf16 %v942_v11, %v942_v11  ;;  %v2811_v15 = vpop.f32.mrb[33].mxu1 }
 0x120   :  { %2906 = vmatmul.mubr.msk.bf16.vlgmr.msra.gmra.mrb[60].mxu1 %vm1239_vm2, %v1230_v8  ;;  %2911 = vmatprep.mubr.msk.bf16.mxu0 %vm3091_vm0, %v3090_v1  ;;  %v945_v16 = vpop.f32.mrb[34].mxu1 }
 0x121   :  { %2917 = vmatprep.mubr.msk.bf16.mxu1 %vm3091_vm0, %v3090_v1  ;;  %2910 = vmatpush3.bf16.msra.mxu0 %v1717_v12  ;;  %v1763_v17 = vsel %vm1715_vm3, %v1705_v14, 0  ;;  %v2812_v18 = vpop.f32.mrb[35].mxu1 }
 0x122   :  { %2921 = vmatprep.subr.bf16.mxu0 %v3090_v1  ;;  %2916 = vmatpush3.bf16.msra.mxu1 %v1763_v17 }
 0x123   :  { %2927 = vmatprep.subr.bf16.mxu1 %v3090_v1 }
 0x124   :  { %v3407_v19 = vpop.f32.mrb[36].mxu0 }
 0x125   :  { %v2819_v20 = vpop.f32.mrb[37].mxu0 }
 0x126   :  { %v997_v21 = vpop.f32.mrb[38].mxu0  ;;  %v3409_v22 = vpop.f32.mrb[36].mxu1 }
 0x127   :  { %v2820_v23 = vpop.f32.mrb[39].mxu0  ;;  %v2827_v24 = vpop.f32.mrb[37].mxu1 }
 0x128   :  { %v1049_v25 = vpop.f32.mrb[38].mxu1 }
 0x129   :  { %v2828_v26 = vpop.f32.mrb[39].mxu1 }
 0x12c   :  { %v3411_v27 = vpop.f32.mrb[40].mxu0 }
 0x12d   :  { %v2835_v28 = vpop.f32.mrb[41].mxu0 }
 0x12e   :  { %v1092_v29 = vpop.f32.mrb[42].mxu0  ;;  %v3413_v30 = vpop.f32.mrb[40].mxu1 }
 0x12f   :  { %v2836_v31 = vpop.f32.mrb[43].mxu0  ;;  %v2843_v32 = vpop.f32.mrb[41].mxu1 }
 0x130   :  { %v1132_v33 = vpop.f32.mrb[42].mxu1 }
 0x131   :  { %v2844_v34 = vpop.f32.mrb[43].mxu1 }
 0x134   :  { %v3415_v35 = vpop.f32.mrb[44].mxu0 }
 0x135   :  { %v2851_v36 = vpop.f32.mrb[45].mxu0 }
 0x136   :  { %v1172_v37 = vpop.f32.mrb[46].mxu0  ;;  %v3417_v38 = vpop.f32.mrb[44].mxu1 }
 0x137   :  { %v2852_v39 = vpop.f32.mrb[47].mxu0  ;;  %v2859_v40 = vpop.f32.mrb[45].mxu1 }
 0x138   :  { %v1212_v41 = vpop.f32.mrb[46].mxu1 }
 0x139   :  { %v2860_v42 = vpop.f32.mrb[47].mxu1 }
 0x1da   :  { %v1280_v43 = vpop.f32.mrb[48].mxu0 }
 0x1db   :  { %v1326_v44 = vpop.f32.mrb[48].mxu1  ;;  %v2865_v45 = vpop.f32.mrb[49].mxu0  ;;  %v1608_v46 = vsel %vm1239_vm2, %v1280_v43, -inf }
 0x1dc   :  { %v2871_v47 = vpop.f32.mrb[49].mxu1  ;;  %1609 = vmax.xlane.f32.xlu0 %v1608_v46  ;;  %v1283_v48 = vpop.f32.mrb[50].mxu0  ;;  %v1611_v52 = vsel %vm1239_vm2, %v1326_v44, -inf }
 0x1dd   :  { %v1329_v49 = vpop.f32.mrb[50].mxu1  ;;  %v2866_v50 = vpop.f32.mrb[51].mxu0 }
 0x1de   :  { %v2872_v51 = vpop.f32.mrb[51].mxu1 }
 0x1e0   :  { %1612 = vmax.xlane.f32.xlu0 %v1611_v52 }
 0x1e2   :  { %v1372_v54 = vpop.f32.mrb[52].mxu0 }
 0x1e3   :  { %v1418_v56 = vpop.f32.mrb[52].mxu1  ;;  %v2877_v57 = vpop.f32.mrb[53].mxu0  ;;  %v1614_v58 = vsel %vm1239_vm2, %v1372_v54, -inf }
 0x1e4   :  { %v2883_v59 = vpop.f32.mrb[53].mxu1  ;;  %1615 = vmax.xlane.f32.xlu1 %v1614_v58  ;;  %v1375_v53 = vpop.f32.mrb[54].mxu0  ;;  %v1617_v2 = vsel %vm1239_vm2, %v1418_v56, -inf }
 0x1e5   :  { %v1421_v60 = vpop.f32.mrb[54].mxu1  ;;  %v2878_v62 = vpop.f32.mrb[55].mxu0 }
 0x1e6   :  { %v2884_v0 = vpop.f32.mrb[55].mxu1 }
 0x1e8   :  { %1618 = vmax.xlane.f32.xlu1 %v1617_v2 }
 0x1ea   :  { %v1464_v55 = vpop.f32.mrb[56].mxu0 }
 0x1eb   :  { %v1510_v3 = vpop.f32.mrb[56].mxu1  ;;  %v2889_v4 = vpop.f32.mrb[57].mxu0  ;;  %v1620_v5 = vsel %vm1239_vm2, %v1464_v55, -inf }
 0x1ec   :  { %v2895_v6 = vpop.f32.mrb[57].mxu1  ;;  %v1623_v7 = vsel %vm1239_vm2, %v1510_v3, -inf  ;;  %1621 = vmax.xlane.f32.xlu0 %v1620_v5  ;;  %v1467_v8 = vpop.f32.mrb[58].mxu0 }
 0x1ed   :  { %v1513_v61 = vpop.f32.mrb[58].mxu1  ;;  %1624 = vmax.xlane.f32.xlu1 %v1623_v7  ;;  %v2890_v63 = vpop.f32.mrb[59].mxu0 }
 0x1ee   :  { %v2896_v9 = vpop.f32.mrb[59].mxu1  ;;  %v1706_v61 = vpack.c.bf16 %v3407_v19, %v3407_v19 }
 0x1f2   :  { %v1556_v10 = vpop.f32.mrb[60].mxu0 }
 0x1f3   :  { %v1602_v11 = vpop.f32.mrb[60].mxu1  ;;  %v2901_v12 = vpop.f32.mrb[61].mxu0  ;;  %v1626_v13 = vsel %vm1239_vm2, %v1556_v10, -inf }
 0x1f4   :  { %v2907_v14 = vpop.f32.mrb[61].mxu1  ;;  %v1629_v15 = vsel %vm1239_vm2, %v1602_v11, -inf  ;;  %1627 = vmax.xlane.f32.xlu0 %v1626_v13  ;;  %v1559_v16 = vpop.f32.mrb[62].mxu0  ;;  %v1809_v12 = vsel %vm1715_vm3, %v1706_v61, 0  ;;  %v1707_v13 = vpack.c.bf16 %v3409_v22, %v3409_v22  ;;  %v1708_v22 = vpack.c.bf16 %v3411_v27, %v3411_v27 }
 0x1f5   :  { %v1605_v17 = vpop.f32.mrb[62].mxu1  ;;  %1630 = vmax.xlane.f32.xlu1 %v1629_v15  ;;  %v2902_v18 = vpop.f32.mrb[63].mxu0 }
 0x1f6   :  { %v2908_v20 = vpop.f32.mrb[63].mxu1  ;;  %v1855_v18 = vsel %vm1715_vm3, %v1707_v13, 0 }
 0x269   :  { %v1610_v21 = vpop.xlane.xlu0 %1609 }
 0x26a   :  { %v1632_v23 = vsub.f32 %v1280_v43, %v1610_v21 }
 0x26c   :  { %v1640_v24 = vmul.f32 1.442695, %v1632_v23 }
 0x26d   :  { %v1613_v25 = vpop.xlane.xlu0 %1612 }
 0x26e   :  { %3034 = vpow2.f32 %v1640_v24  ;;  %v1633_v26 = vsub.f32 %v1326_v44, %v1613_v25  ;;  %v1901_v24 = vsel %vm1715_vm3, %v1708_v22, 0  ;;  %v1709_v25 = vpack.c.bf16 %v3413_v30, %v3413_v30 }
 0x26f   :  { %v1710_v30 = vpack.c.bf16 %v3415_v35, %v3415_v35 }
 0x270   :  { %v1642_v28 = vmul.f32 1.442695, %v1633_v26 }
 0x271   :  { %v1616_v29 = vpop.xlane.xlu1 %1615 }
 0x272   :  { %3036 = vpow2.f32 %v1642_v28  ;;  %v1634_v31 = vsub.f32 %v1372_v54, %v1616_v29 }
 0x274   :  { %v1644_v32 = vmul.f32 1.442695, %v1634_v31 }
 0x275   :  { %v1619_v33 = vpop.xlane.xlu1 %1618 }
 0x276   :  { %3038 = vpow2.f32 %v1644_v32  ;;  %v1635_v34 = vsub.f32 %v1418_v56, %v1619_v33  ;;  %v1947_v33 = vsel %vm1715_vm3, %v1709_v25, 0 }
 0x278   :  { %v3035_v36 = vpop.eup %3034  ;;  %v1646_v37 = vmul.f32 1.442695, %v1635_v34 }
 0x279   :  { %v1622_v39 = vpop.xlane.xlu0 %1621  ;;  %v1656_v40 = vsel %vm1239_vm2, %v3035_v36, 0.0 }
 0x27a   :  { %3040 = vpow2.f32 %v1646_v37  ;;  %v1625_v41 = vpop.xlane.xlu1 %1624  ;;  %v1636_v42 = vsub.f32 %v1464_v55, %v1622_v39  ;;  %1657 = vadd.xlane.f32.xlu0 %v1656_v40  ;;  %v1993_v39 = vsel %vm1715_vm3, %v1710_v30, 0  ;;  %v1711_v40 = vpack.c.bf16 %v3417_v38, %v3417_v38 }
 0x27b   :  { %v1637_v43 = vsub.f32 %v1510_v3, %v1625_v41 }
 0x27c   :  { %v3037_v45 = vpop.eup %3036  ;;  %v1648_v44 = vmul.f32 1.442695, %v1636_v42  ;;  %v88_v42 = vld [vmem:[%s3569_s6] sm:$0xf] }
 0x27d   :  { %v1650_v46 = vmul.f32 1.442695, %v1637_v43  ;;  %v1659_v47 = vsel %vm1239_vm2, %v3037_v45, 0.0 }
 0x27e   :  { %3042 = vpow2.f32 %v1648_v44  ;;  %1660 = vadd.xlane.f32.xlu1 %v1659_v47  ;;  %v2093_v47 = vsel %vm1715_vm3, %v88_v42, 0 }
 0x27f   :  { %3044 = vpow2.f32 %v1650_v46 }
 0x280   :  { %v3039_v48 = vpop.eup %3038 }
 0x281   :  { %v1628_v49 = vpop.xlane.xlu0 %1627  ;;  %v1662_v50 = vsel %vm1239_vm2, %v3039_v48, 0.0 }
 0x282   :  { %v1631_v51 = vpop.xlane.xlu1 %1630  ;;  %v1638_v52 = vsub.f32 %v1556_v10, %v1628_v49  ;;  %1663 = vadd.xlane.f32.xlu0 %v1662_v50  ;;  %v89_v49 = vld [vmem:[%s3569_s6 + $0x4] sm:$0xf] }
 0x283   :  { %v1639_v54 = vsub.f32 %v1602_v11, %v1631_v51  ;;  %v2139_v50 = vsel %vm1715_vm3, %v89_v49, 0  ;;  %v90_v51 = vld [vmem:[%s3569_s6 + $0x8] sm:$0xf] }
 0x284   :  { %v3041_v56 = vpop.eup %3040  ;;  %v1652_v57 = vmul.f32 1.442695, %v1638_v52 }
 0x285   :  { %v1654_v58 = vmul.f32 1.442695, %v1639_v54  ;;  %v1665_v59 = vsel %vm1239_vm2, %v3041_v56, 0.0 }
 0x286   :  { %3046 = vpow2.f32 %v1652_v57  ;;  %1666 = vadd.xlane.f32.xlu1 %v1665_v59  ;;  %v2185_v57 = vsel %vm1715_vm3, %v90_v51, 0  ;;  %v91_v59 = vld [vmem:[%s3569_s6 + $0xc] sm:$0xf]  ;;  %s3092_s6 = smov [#allocation2]  }
 0x287   :  { %3048 = vpow2.f32 %v1654_v58  ;;  %s2466_s14 = sshll.u32 %s3092_s6, 4  ;;  %s2467_s14 = int_to_ptr.vmem [resolvable:$true] %s2466_s14 }
 0x288   :  { %v3431_v53 = vpop.eup %3042  ;;  %s3066_s1 = scalar_lea.vmem %s2467_s14, 256  ;;  %p3071_p1 = scmp.lt.s32.totalorder %s2467_s14, %s2467_s14 }
 0x289   :  { %v3433_v60 = vpop.eup %3044  ;;  %v1668_v62 = vsel %vm1239_vm2, %v3431_v53, 0.0  ;;  %p3067_p0 = scmp.ne.s32.totalorder %s2467_s14, %s3066_s1  ;;  %p3072_p2 = scmp.lt.s32.totalorder %s3066_s1, %s3066_s1 }
 0x28a   :  { %v1671_v0 = vsel %vm1239_vm2, %v3433_v60, 0.0  ;;  %1669 = vadd.xlane.f32.xlu0 %v1668_v62 }
 0x28b   :  { %1672 = vadd.xlane.f32.xlu1 %v1671_v0  ;;  %p3073_p3 = por %p3072_p2, %p3071_p1 }
 0x28d   :  { %p3074_p4 = pnand %p3073_p3, %p3067_p0 }
 0x290   :  { %v3439_v2 = vpop.eup %3046 }
 0x291   :  { %v3441_v55 = vpop.eup %3048  ;;  %v1674_v3 = vsel %vm1239_vm2, %v3439_v2, 0.0 }
 0x292   :  { %v1677_v4 = vsel %vm1239_vm2, %v3441_v55, 0.0  ;;  %1675 = vadd.xlane.f32.xlu0 %v1674_v3 }
 0x293   :  { %1678 = vadd.xlane.f32.xlu1 %v1677_v4 }
 0x307   :  { %v1658_v5 = vpop.xlane.xlu0 %1657 }
 0x308   :  { %3050 = vrcp.f32 %v1658_v5 }
 0x30b   :  { %v1661_v6 = vpop.xlane.xlu1 %1660 }
 0x30c   :  { %3052 = vrcp.f32 %v1661_v6 }
 0x30f   :  { %v1664_v7 = vpop.xlane.xlu0 %1663 }
 0x310   :  { %3054 = vrcp.f32 %v1664_v7 }
 0x312   :  { %v3051_v8 = vpop.eup %3050 }
 0x313   :  { %v1688_v63 = vmul.f32 %v3051_v8, %v3035_v36  ;;  %v1667_v9 = vpop.xlane.xlu1 %1666 }
 0x314   :  { %3056 = vrcp.f32 %v1667_v9 }
 0x315   :  { %v1696_v10 = vpack.c.bf16 %v1688_v63, %v1688_v63 }
 0x316   :  { %v3053_v11 = vpop.eup %3052 }
 0x317   :  { %v1689_v14 = vmul.f32 %v3053_v11, %v3037_v45  ;;  %2912 = vmatmul.mubr.msk.bf16.vlgmr.msra.gmra.mrb[64].mxu0 %vm1239_vm2, %v1696_v10  ;;  %v1670_v15 = vpop.xlane.xlu0 %1669  ;;  %v2039_v45 = vsel %vm1715_vm3, %v1711_v40, 0 }
 0x318   :  { %v1673_v16 = vpop.xlane.xlu1 %1672  ;;  %2922 = vmatpush3.bf16.msra.mxu0 %v1809_v12  ;;  %3058 = vrcp.f32 %v1670_v15  ;;  %2923 = vmatprep.mubr.msk.bf16.mxu0 %vm3091_vm0, %v3090_v1 }
 0x319   :  { %3060 = vrcp.f32 %v1673_v16  ;;  %v1697_v19 = vpack.c.bf16 %v1689_v14, %v1689_v14  ;;  %2933 = vmatprep.subr.bf16.mxu0 %v3090_v1 }
 0x31a   :  { %v3055_v17 = vpop.eup %3054 }
 0x31b   :  { %v1690_v20 = vmul.f32 %v3055_v17, %v3039_v48  ;;  %2918 = vmatmul.mubr.msk.bf16.vlgmr.msra.gmra.mrb[64].mxu1 %vm1239_vm2, %v1697_v19 }
 0x31c   :  { %2928 = vmatpush3.bf16.msra.mxu1 %v1855_v18  ;;  %2929 = vmatprep.mubr.msk.bf16.mxu1 %vm3091_vm0, %v3090_v1 }
 0x31d   :  { %v1698_v21 = vpack.c.bf16 %v1690_v20, %v1690_v20  ;;  %2939 = vmatprep.subr.bf16.mxu1 %v3090_v1 }
 0x31e   :  { %v3057_v23 = vpop.eup %3056 }
 0x31f   :  { %v1691_v26 = vmul.f32 %v3057_v23, %v3041_v56  ;;  %2924 = vmatmul.mubr.msk.bf16.vlgmr.msra.gmra.mrb[68].mxu0 %vm1239_vm2, %v1698_v21  ;;  %v1676_v27 = vpop.xlane.xlu0 %1675 }
 0x320   :  { %v1679_v28 = vpop.xlane.xlu1 %1678  ;;  %2934 = vmatpush3.bf16.msra.mxu0 %v1901_v24  ;;  %3062 = vrcp.f32 %v1676_v27  ;;  %2935 = vmatprep.mubr.msk.bf16.mxu0 %vm3091_vm0, %v3090_v1 }
 0x321   :  { %3064 = vrcp.f32 %v1679_v28  ;;  %v1699_v29 = vpack.c.bf16 %v1691_v26, %v1691_v26  ;;  %2945 = vmatprep.subr.bf16.mxu0 %v3090_v1 }
 0x322   :  { %v3059_v31 = vpop.eup %3058 }
 0x323   :  { %v3061_v32 = vpop.eup %3060  ;;  %v1692_v34 = vmul.f32 %v3059_v31, %v3431_v53  ;;  %2930 = vmatmul.mubr.msk.bf16.vlgmr.msra.gmra.mrb[68].mxu1 %vm1239_vm2, %v1699_v29 }
 0x324   :  { %2940 = vmatpush3.bf16.msra.mxu1 %v1947_v33  ;;  %2941 = vmatprep.mubr.msk.bf16.mxu1 %vm3091_vm0, %v3090_v1  ;;  %v1693_v36 = vmul.f32 %v3061_v32, %v3433_v60 }
 0x325   :  { %v1700_v37 = vpack.c.bf16 %v1692_v34, %v1692_v34  ;;  %2951 = vmatprep.subr.bf16.mxu1 %v3090_v1 }
 0x326   :  { %v1701_v35 = vpack.c.bf16 %v1693_v36, %v1693_v36 }
 0x327   :  { %2936 = vmatmul.mubr.msk.bf16.vlgmr.msra.gmra.mrb[72].mxu0 %vm1239_vm2, %v1700_v37 }
 0x328   :  { %2946 = vmatpush3.bf16.msra.mxu0 %v1993_v39  ;;  %2947 = vmatprep.mubr.msk.bf16.mxu0 %vm3091_vm0, %v3090_v1 }
 0x329   :  { %2957 = vmatprep.subr.bf16.mxu0 %v3090_v1 }
 0x32a   :  { %v3063_v41 = vpop.eup %3062 }
 0x32b   :  { %v3065_v43 = vpop.eup %3064  ;;  %v1694_v44 = vmul.f32 %v3063_v41, %v3439_v2  ;;  %2942 = vmatmul.mubr.msk.bf16.vlgmr.msra.gmra.mrb[72].mxu1 %vm1239_vm2, %v1701_v35  ;;  %v2231_v2 = vsel %vm1715_vm3, %v91_v59, 0 }
 0x32c   :  { %2952 = vmatpush3.bf16.msra.mxu1 %v2039_v45  ;;  %2953 = vmatprep.mubr.msk.bf16.mxu1 %vm3091_vm0, %v3090_v1  ;;  %v1695_v38 = vmul.f32 %v3065_v43, %v3441_v55 }
 0x32d   :  { %v1702_v46 = vpack.c.bf16 %v1694_v44, %v1694_v44  ;;  %2963 = vmatprep.subr.bf16.mxu1 %v3090_v1 }
 0x32e   :  { %v1703_v48 = vpack.c.bf16 %v1695_v38, %v1695_v38 }
 0x32f   :  { %2948 = vmatmul.mubr.msk.bf16.vlgmr.msra.gmra.mrb[76].mxu0 %vm1239_vm2, %v1702_v46 }
 0x330   :  { %2958 = vmatpush3.bf16.msra.mxu0 %v2093_v47  ;;  %2959 = vmatprep.mubr.msk.bf16.mxu0 %vm3091_vm0, %v3090_v1 }
 0x331   :  { %2969 = vmatprep.subr.bf16.mxu0 %v3090_v1 }
 0x333   :  { %2954 = vmatmul.mubr.msk.bf16.vlgmr.msra.gmra.mrb[76].mxu1 %vm1239_vm2, %v1703_v48 }
 0x334   :  { %2965 = vmatprep.mubr.msk.bf16.mxu1 %vm3091_vm0, %v3090_v1  ;;  %2964 = vmatpush3.bf16.msra.mxu1 %v2139_v50 }
 0x335   :  { %2975 = vmatprep.subr.bf16.mxu1 %v3090_v1 }
 0x3ea   :  { %v1753_v52 = vpop.f32.mrb[64].mxu0 }
 0x3eb   :  { %v2081_v54 = vpack.c.bf16 %v1753_v52, %v1753_v52  ;;  %v2913_v56 = vpop.f32.mrb[65].mxu0 }
 0x3ec   :  { %v1756_v58 = vpop.f32.mrb[66].mxu0 }
 0x3ed   :  { %v2914_v53 = vpop.f32.mrb[67].mxu0  ;;  %2960 = vmatmul.mubr.msk.bf16.vlgmr.msra.gmra.mrb[80].mxu0 %vm1239_vm2, %v2081_v54 }
 0x3ee   :  { %v1799_v60 = vpop.f32.mrb[64].mxu1  ;;  %2970 = vmatpush3.bf16.msra.mxu0 %v2185_v57  ;;  %2971 = vmatprep.mubr.msk.bf16.mxu0 %vm3091_vm0, %v3090_v1 }
 0x3ef   :  { %v2082_v62 = vpack.c.bf16 %v1799_v60, %v1799_v60  ;;  %v2919_v0 = vpop.f32.mrb[65].mxu1  ;;  %2981 = vmatprep.subr.bf16.mxu0 %v3090_v1 }
 0x3f0   :  { %v1802_v55 = vpop.f32.mrb[66].mxu1 }
 0x3f1   :  { %v2920_v3 = vpop.f32.mrb[67].mxu1  ;;  %2966 = vmatmul.mubr.msk.bf16.vlgmr.msra.gmra.mrb[80].mxu1 %vm1239_vm2, %v2082_v62 }
 0x3f2   :  { %v1845_v4 = vpop.f32.mrb[68].mxu0  ;;  %2976 = vmatpush3.bf16.msra.mxu1 %v2231_v2  ;;  %2977 = vmatprep.mubr.msk.bf16.mxu1 %vm3091_vm0, %v3090_v1 }
 0x3f3   :  { %v2083_v5 = vpack.c.bf16 %v1845_v4, %v1845_v4  ;;  %v2925_v6 = vpop.f32.mrb[69].mxu0  ;;  %2987 = vmatprep.subr.bf16.mxu1 %v3090_v1 }
 0x3f4   :  { %v1848_v7 = vpop.f32.mrb[70].mxu0 }
 0x3f5   :  { %v2926_v8 = vpop.f32.mrb[71].mxu0  ;;  %2972 = vmatmul.mubr.msk.bf16.vlgmr.msra.gmra.mrb[84].mxu0 %vm1239_vm2, %v2083_v5 }
 0x3f6   :  { %v1891_v61 = vpop.f32.mrb[68].mxu1  ;;  %2982 = vmatpush3.bf16.msra.mxu0 %v2093_v47  ;;  %2983 = vmatprep.mubr.msk.bf16.mxu0 %vm3091_vm0, %v3090_v1 }
 0x3f7   :  { %v2084_v63 = vpack.c.bf16 %v1891_v61, %v1891_v61  ;;  %v2931_v9 = vpop.f32.mrb[69].mxu1  ;;  %2993 = vmatprep.subr.bf16.mxu0 %v3090_v1 }
 0x3f8   :  { %v1894_v10 = vpop.f32.mrb[70].mxu1 }
 0x3f9   :  { %v2932_v11 = vpop.f32.mrb[71].mxu1  ;;  %2978 = vmatmul.mubr.msk.bf16.vlgmr.msra.gmra.mrb[84].mxu1 %vm1239_vm2, %v2084_v63 }
 0x3fa   :  { %v1937_v12 = vpop.f32.mrb[72].mxu0  ;;  %2988 = vmatpush3.bf16.msra.mxu1 %v2139_v50  ;;  %2989 = vmatprep.mubr.msk.bf16.mxu1 %vm3091_vm0, %v3090_v1 }
 0x3fb   :  { %v2085_v13 = vpack.c.bf16 %v1937_v12, %v1937_v12  ;;  %v2937_v14 = vpop.f32.mrb[73].mxu0  ;;  %2999 = vmatprep.subr.bf16.mxu1 %v3090_v1 }
 0x3fc   :  { %v1940_v15 = vpop.f32.mrb[74].mxu0 }
 0x3fd   :  { %v2938_v16 = vpop.f32.mrb[75].mxu0  ;;  %2984 = vmatmul.mubr.msk.bf16.vlgmr.msra.gmra.mrb[88].mxu0 %vm1239_vm2, %v2085_v13 }
 0x3fe   :  { %v1983_v19 = vpop.f32.mrb[72].mxu1  ;;  %2994 = vmatpush3.bf16.msra.mxu0 %v2185_v57  ;;  %2995 = vmatprep.mubr.msk.bf16.mxu0 %vm3091_vm0, %v3090_v1 }
 0x3ff   :  { %v2086_v17 = vpack.c.bf16 %v1983_v19, %v1983_v19  ;;  %v2943_v18 = vpop.f32.mrb[73].mxu1 }
 0x400   :  { %v1986_v22 = vpop.f32.mrb[74].mxu1 }
 0x401   :  { %v2944_v20 = vpop.f32.mrb[75].mxu1  ;;  %2990 = vmatmul.mubr.msk.bf16.vlgmr.msra.gmra.mrb[88].mxu1 %vm1239_vm2, %v2086_v17 }
 0x402   :  { %v2029_v21 = vpop.f32.mrb[76].mxu0  ;;  %3000 = vmatpush3.bf16.msra.mxu1 %v2231_v2  ;;  %3001 = vmatprep.mubr.msk.bf16.mxu1 %vm3091_vm0, %v3090_v1 }
 0x403   :  { %v2087_v23 = vpack.c.bf16 %v2029_v21, %v2029_v21  ;;  %v2949_v24 = vpop.f32.mrb[77].mxu0 }
 0x404   :  { %v2032_v25 = vpop.f32.mrb[78].mxu0 }
 0x405   :  { %v2950_v26 = vpop.f32.mrb[79].mxu0  ;;  %2996 = vmatmul.mubr.msk.bf16.vlgmr.msra.gmra.mrb[92].mxu0 %vm1239_vm2, %v2087_v23 }
 0x406   :  { %v2075_v27 = vpop.f32.mrb[76].mxu1 }
 0x407   :  { %v2088_v28 = vpack.c.bf16 %v2075_v27, %v2075_v27  ;;  %v2955_v29 = vpop.f32.mrb[77].mxu1 }
 0x408   :  { %v2078_v31 = vpop.f32.mrb[78].mxu1 }
 0x409   :  { %v2956_v32 = vpop.f32.mrb[79].mxu1  ;;  %3002 = vmatmul.mubr.msk.bf16.vlgmr.msra.gmra.mrb[92].mxu1 %vm1239_vm2, %v2088_v28 }
 0x4c0   :  { %v2129_v33 = vpop.f32.mrb[80].mxu0 }
 0x4c1   :  { %v2961_v30 = vpop.f32.mrb[81].mxu0  ;;  %v2445_v1 = vsel %vm104_vm1, %v2129_v33, 0.0 }
 0x4c2   :  { %v2132_v34 = vpop.f32.mrb[82].mxu0 }
 0x4c3   :  { %v2962_v36 = vpop.f32.mrb[83].mxu0 }
 0x4c4   :  { %v2175_v37 = vpop.f32.mrb[80].mxu1 }
 0x4c5   :  { %v2446_v39 = vsel %vm104_vm1, %v2175_v37, 0.0  ;;  %v2967_v40 = vpop.f32.mrb[81].mxu1 }
 0x4c6   :  { %v2447_v35 = vadd.f32 %v2446_v39, %v2445_v1  ;;  %v2178_v41 = vpop.f32.mrb[82].mxu1 }
 0x4c7   :  { %v2968_v42 = vpop.f32.mrb[83].mxu1 }
 0x4c8   :  { %v2221_v43 = vpop.f32.mrb[84].mxu0 }
 0x4c9   :  { %v2448_v45 = vsel %vm104_vm1, %v2221_v43, 0.0  ;;  %v2973_v44 = vpop.f32.mrb[85].mxu0 }
 0x4ca   :  { %v2449_v38 = vadd.f32 %v2448_v45, %v2447_v35  ;;  %v2224_v46 = vpop.f32.mrb[86].mxu0 }
 0x4cb   :  { %v2974_v47 = vpop.f32.mrb[87].mxu0 }
 0x4cc   :  { %v2267_v48 = vpop.f32.mrb[84].mxu1 }
 0x4cd   :  { %v2450_v49 = vsel %vm104_vm1, %v2267_v48, 0.0  ;;  %v2979_v50 = vpop.f32.mrb[85].mxu1 }
 0x4ce   :  { %v2451_v51 = vadd.f32 %v2450_v49, %v2449_v38  ;;  %v2270_v52 = vpop.f32.mrb[86].mxu1 }
 0x4cf   :  { %v2980_v54 = vpop.f32.mrb[87].mxu1 }
 0x4d0   :  { %2459 = vst.msk [vmem:[#allocation2] sm:$0xff] %vm104_vm1, %v2451_v51  ;;  %v2310_v56 = vpop.f32.mrb[88].mxu0 }
 0x4d1   :  { %v2985_v57 = vpop.f32.mrb[89].mxu0  ;;  %v2452_v60 = vsel %vm104_vm1, %v2310_v56, 0.0 }
 0x4d2   :  { %v2313_v58 = vpop.f32.mrb[90].mxu0 }
 0x4d3   :  { %v2986_v59 = vpop.f32.mrb[91].mxu0 }
 0x4d4   :  { %v2353_v53 = vpop.f32.mrb[88].mxu1 }
 0x4d5   :  { %v2453_v62 = vsel %vm104_vm1, %v2353_v53, 0.0  ;;  %v2991_v0 = vpop.f32.mrb[89].mxu1 }
 0x4d6   :  { %v2454_v2 = vadd.f32 %v2453_v62, %v2452_v60  ;;  %v2356_v55 = vpop.f32.mrb[90].mxu1 }
 0x4d7   :  { %v2992_v3 = vpop.f32.mrb[91].mxu1 }
 0x4d8   :  { %v2396_v4 = vpop.f32.mrb[92].mxu0 }
 0x4d9   :  { %v2455_v5 = vsel %vm104_vm1, %v2396_v4, 0.0  ;;  %v2997_v6 = vpop.f32.mrb[93].mxu0 }
 0x4da   :  { %v2456_v7 = vadd.f32 %v2455_v5, %v2454_v2  ;;  %v2399_v8 = vpop.f32.mrb[94].mxu0 }
 0x4db   :  { %v2998_v61 = vpop.f32.mrb[95].mxu0 }
 0x4dc   :  { %v2439_v63 = vpop.f32.mrb[92].mxu1 }
 0x4dd   :  { %v2457_v9 = vsel %vm104_vm1, %v2439_v63, 0.0  ;;  %v3003_v10 = vpop.f32.mrb[93].mxu1 }
 0x4de   :  { %v2458_v11 = vadd.f32 %v2457_v9, %v2456_v7  ;;  %v2442_v12 = vpop.f32.mrb[94].mxu1 }
 0x4df   :  { %v3004_v13 = vpop.f32.mrb[95].mxu1 }
 0x4e0   :  { %2460 = vst.msk [vmem:[#allocation2 + $0x8] sm:$0xff] %vm104_vm1, %v2458_v11 }
 0x4e1   :  { %3077 = shalt.err (!%p3074_p4)
}
 0x4e2   :  { %s3078_s17 = scalar_lea.hbm %s3570_s7, 256 }
 0x4e3   :  { %p3079_p5 = scmp.ne.s32.totalorder %s3570_s7, %s3078_s17  ;;  %p3082_p6 = scmp.lt.u32.totalorder %s3078_s17, %s3570_s7 }
 0x4e5   :  { %p3084_p7 = pnand %p3082_p6, %p3079_p5 }
 0x4e7   :  { %3087 = shalt.err (!%p3084_p7)
}
 0x4e8   :  { %s3093_s20 = smov 128   ;;  %s3094_s21 = smov 8  }
 0x4e9   :  { %2472 = dma.vmem_to_hbm [thread:$0]  %s2467_s14, 256, %s3570_s7, [#allocation3], %s3093_s20, %s3093_s20, %s3094_s21  }
 0x4ea   :  { %3088 = dma.done.wait [#allocation3], 256  }
 0x4eb   :  { %3089 = vsyncadd [#allocation3], 4294967040 }
 0x4ec   :  { %2476 = vsyncpa [#allocation3], 1 }

</bundles_post_ra>
